<compile_context>
chip_gen: v6e
topology: v6e:2x2x1
jax: 0.10.0
libtpu: 0.0.40
codegen_flags: <defaults>
</compile_context>

<pallas_src>
import functools

import jax
import jax.numpy as jnp
from jax.experimental import pallas as pl
from jax.experimental.pallas import tpu as pltpu


def _round_up(x, m):
    return (x + m - 1) // m * m


def _make_kernel(rows_per_tile, hw_padded, inv_denom, use_target_weight):
    n_row_groups = rows_per_tile // 8

    def _step(i, p, g, w, out_ref, acc_ref):
        # Zero the resident accumulator on the first reduction step.
        @pl.when(i == 0)
        def _():
            acc_ref[...] = jnp.zeros_like(acc_ref)

        diff = p - g
        if w is not None:
            diff = diff * w                      # (tr, 1) row weight, fused mul
        sq = diff * diff                         # (tr, HWp) f32

        # Defer the cross-lane/sublane reduce: only elementwise (VALU) adds of
        # whole vreg rows per step, accumulated into an (8, HWp) scratch.
        if n_row_groups == 1:
            partial = sq
        else:
            partial = sq.reshape(n_row_groups, 8, hw_padded).sum(axis=0)
        acc_ref[...] += partial

        # Single XLU reduce + scalar write, once, at the end of the grid.
        @pl.when(i == pl.num_programs(0) - 1)
        def _():
            out_ref[0, 0] = 0.5 * jnp.sum(acc_ref[...]) * inv_denom

    if use_target_weight:
        def kernel(pred_ref, gt_ref, w_ref, out_ref, acc_ref):
            _step(pl.program_id(0),
                  pred_ref[...].astype(jnp.float32),
                  gt_ref[...].astype(jnp.float32),
                  w_ref[...].astype(jnp.float32),
                  out_ref, acc_ref)
    else:
        def kernel(pred_ref, gt_ref, out_ref, acc_ref):
            _step(pl.program_id(0),
                  pred_ref[...].astype(jnp.float32),
                  gt_ref[...].astype(jnp.float32),
                  None, out_ref, acc_ref)
    return kernel


def joints_mse_loss(output, target, target_weight=None, use_target_weight=True):
    """output, target: (B, J, H, W); target_weight: (B, J, 1). Returns scalar f32."""
    B, J, H, W = output.shape
    HW = H * W
    R = B * J

    # Lane-dense 2D layout; keep native dtype (upcast happens per tile in-kernel).
    pred = output.reshape(R, HW)
    gt = target.reshape(R, HW)

    # Pad the lane dim to a multiple of 128 (zeros contribute nothing to the sum).
    HWp = _round_up(HW, 128)
    if HWp != HW:
        pred = jnp.pad(pred, ((0, 0), (0, HWp - HW)))
        gt = jnp.pad(gt, ((0, 0), (0, HWp - HW)))

    # Row-tile size: largest multiple of 8 giving ~4 MiB per input tile, so
    # 2 inputs x 2 pipeline buffers stays well inside VMEM on v5e/v6e/v7x.
    itemsize = pred.dtype.itemsize
    target_tile_bytes = 4 * 1024 * 1024
    tr = max(8, min(1024, target_tile_bytes // (HWp * itemsize)))
    tr = (tr // 8) * 8

    Rp = _round_up(R, 8)
    if Rp <= tr:
        tr = Rp
    else:
        Rp = _round_up(Rp, tr)
    if Rp != R:
        pred = jnp.pad(pred, ((0, Rp - R), (0, 0)))
        gt = jnp.pad(gt, ((0, Rp - R), (0, 0)))

    n_tiles = Rp // tr
    inv_denom = 1.0 / float(J * B * HW)

    kernel = _make_kernel(tr, HWp, inv_denom, use_target_weight)

    row_spec = pl.BlockSpec((tr, HWp), lambda i: (i, 0))
    out_spec = pl.BlockSpec((1, 1), lambda i: (0, 0),
                            memory_space=pltpu.MemorySpace.SMEM)
    scratch = [pltpu.VMEM((8, HWp), jnp.float32)]
    cparams = pltpu.CompilerParams(
        dimension_semantics=("arbitrary",),
        vmem_limit_bytes=64 * 1024 * 1024,
    )
    out_shape = jax.ShapeDtypeStruct((1, 1), jnp.float32)

    if use_target_weight:
        w = target_weight.reshape(R, 1)
        if Rp != R:
            w = jnp.pad(w, ((0, Rp - R), (0, 0)))   # zero weight on pad rows
        out = pl.pallas_call(
            kernel,
            out_shape=out_shape,
            grid=(n_tiles,),
            in_specs=[row_spec, row_spec,
                      pl.BlockSpec((tr, 1), lambda i: (i, 0))],
            out_specs=out_spec,
            scratch_shapes=scratch,
            compiler_params=cparams,
        )(pred, gt, w)
    else:
        # No weight array is passed/DMA'd at all in this mode.
        out = pl.pallas_call(
            kernel,
            out_shape=out_shape,
            grid=(n_tiles,),
            in_specs=[row_spec, row_spec],
            out_specs=out_spec,
            scratch_shapes=scratch,
            compiler_params=cparams,
        )(pred, gt)

    return out[0, 0]


def joints_mse_loss_ref(output, target, target_weight, use_target_weight=True):
    """Pure-JAX reference mirroring the PyTorch per-joint loop (f32 math)."""
    B, J = output.shape[:2]
    pred = output.reshape(B, J, -1).astype(jnp.float32)
    gt = target.reshape(B, J, -1).astype(jnp.float32)
    tw = target_weight.astype(jnp.float32)
    loss = 0.0
    for idx in range(J):
        hp = pred[:, idx, :]
        hg = gt[:, idx, :]
        if use_target_weight:
            wt = tw[:, idx]                      # (B, 1)
            hp = hp * wt
            hg = hg * wt
        loss = loss + 0.5 * jnp.mean((hp - hg) ** 2)
    return loss / J


if __name__ == "__main__":
    key = jax.random.PRNGKey(0)
    k1, k2, k3 = jax.random.split(key, 3)

    B, J, H, W = 2, 4, 16, 16
    output = jax.random.normal(k1, (B, J, H, W), dtype=jnp.float32)
    target = jax.random.normal(k2, (B, J, H, W), dtype=jnp.float32)
    target_weight = jax.random.uniform(k3, (B, J, 1), dtype=jnp.float32)

    # weighted path (f32)
    loss = jax.block_until_ready(
        joints_mse_loss(output, target, target_weight, use_target_weight=True))
    ref = joints_mse_loss_ref(output, target, target_weight, use_target_weight=True)
    assert jnp.allclose(loss, ref, rtol=1e-5, atol=1e-6), (loss, ref)

    # unweighted path (weight array never passed to the kernel)
    loss_nw = jax.block_until_ready(
        joints_mse_loss(output, target, use_target_weight=False))
    ref_nw = joints_mse_loss_ref(output, target, target_weight, use_target_weight=False)
    assert jnp.allclose(loss_nw, ref_nw, rtol=1e-5, atol=1e-6), (loss_nw, ref_nw)

    # native bf16 inputs streamed as-is; upcast happens per tile inside the kernel
    out_bf = output.astype(jnp.bfloat16)
    tgt_bf = target.astype(jnp.bfloat16)
    tw_bf = target_weight.astype(jnp.bfloat16)
    loss_bf = jax.block_until_ready(
        joints_mse_loss(out_bf, tgt_bf, tw_bf, use_target_weight=True))
    ref_bf = joints_mse_loss_ref(out_bf, tgt_bf, tw_bf, use_target_weight=True)
    assert jnp.allclose(loss_bf, ref_bf, rtol=1e-3, atol=1e-5), (loss_bf, ref_bf)

    print("KERNEL_OK")
</pallas_src>

<mosaic_0001>
module attributes {stable_mosaic.version = 11 : i64} {
  func.func @kernel(%arg0: i32, %arg1: memref<8x256xf32, #tpu.memory_space<vmem>>, %arg2: memref<8x256xf32, #tpu.memory_space<vmem>>, %arg3: memref<8x1xf32, #tpu.memory_space<vmem>>, %arg4: memref<1x1xf32, #tpu.memory_space<smem>>, %arg5: memref<8x256xf32, #tpu.memory_space<vmem>>) attributes {dimension_semantics = [#tpu.dimension_semantics<arbitrary>], iteration_bounds = array<i64: 1>, scalar_prefetch = 0 : i64, scratch_operands = 1 : i64, tpu.core_type = #tpu.core_type<tc>, window_params = [{transform_indices = @transform_0, window_bounds = array<i64: 8, 256>}, {transform_indices = @transform_1, window_bounds = array<i64: 8, 256>}, {transform_indices = @transform_2, window_bounds = array<i64: 8, 1>}, {transform_indices = @transform_3, window_bounds = array<i64: 1, 1>}]} {
    %c0 = arith.constant 0 : index
    %c0_0 = arith.constant 0 : index
    %0 = vector.load %arg1[%c0, %c0_0] : memref<8x256xf32, #tpu.memory_space<vmem>>, vector<8x256xf32>
    %c0_1 = arith.constant 0 : index
    %c0_2 = arith.constant 0 : index
    %1 = vector.load %arg2[%c0_1, %c0_2] : memref<8x256xf32, #tpu.memory_space<vmem>>, vector<8x256xf32>
    %c0_3 = arith.constant 0 : index
    %c0_4 = arith.constant 0 : index
    %2 = vector.load %arg3[%c0_3, %c0_4] : memref<8x1xf32, #tpu.memory_space<vmem>>, vector<8x1xf32>
    %c0_i32 = arith.constant 0 : i32
    %3 = arith.cmpi eq, %arg0, %c0_i32 : i32
    %4 = arith.extui %3 : i1 to i32
    %c0_i32_5 = arith.constant 0 : i32
    %5 = arith.cmpi ne, %4, %c0_i32_5 : i32
    scf.if %5 {
      %cst = arith.constant 0.000000e+00 : f32
      %16 = vector.broadcast %cst : f32 to vector<8x256xf32>
      %c0_12 = arith.constant 0 : index
      %c0_13 = arith.constant 0 : index
      %17 = vector.load %arg5[%c0_12, %c0_13] : memref<8x256xf32, #tpu.memory_space<vmem>>, vector<8x256xf32>
      tpu.vector_store %arg5[%c0_12, %c0_13], %16 {strides = array<i32>} : memref<8x256xf32, #tpu.memory_space<vmem>>, vector<8x256xf32>,
    } else {
    }
    %6 = arith.subf %0, %1 : vector<8x256xf32>
    %7 = vector.broadcast %2 : vector<8x1xf32> to vector<8x256xf32>
    %8 = arith.mulf %6, %7 : vector<8x256xf32>
    %9 = arith.mulf %8, %8 : vector<8x256xf32>
    %c0_6 = arith.constant 0 : index
    %c0_7 = arith.constant 0 : index
    %10 = vector.load %arg5[%c0_6, %c0_7] : memref<8x256xf32, #tpu.memory_space<vmem>>, vector<8x256xf32>
    %11 = arith.addf %10, %9 : vector<8x256xf32>
    %c0_8 = arith.constant 0 : index
    %c0_9 = arith.constant 0 : index
    %12 = vector.load %arg5[%c0_8, %c0_9] : memref<8x256xf32, #tpu.memory_space<vmem>>, vector<8x256xf32>
    tpu.vector_store %arg5[%c0_8, %c0_9], %11 {strides = array<i32>} : memref<8x256xf32, #tpu.memory_space<vmem>>, vector<8x256xf32>,
    %c0_i32_10 = arith.constant 0 : i32
    %13 = arith.cmpi eq, %arg0, %c0_i32_10 : i32
    %14 = arith.extui %13 : i1 to i32
    %c0_i32_11 = arith.constant 0 : i32
    %15 = arith.cmpi ne, %14, %c0_i32_11 : i32
    scf.if %15 {
      %c0_12 = arith.constant 0 : index
      %c0_13 = arith.constant 0 : index
      %16 = vector.load %arg5[%c0_12, %c0_13] : memref<8x256xf32, #tpu.memory_space<vmem>>, vector<8x256xf32>
      %17 = vector.shape_cast %16 : vector<8x256xf32> to vector<1x8x256xf32>
      %cst = arith.constant dense<0.000000e+00> : vector<1xf32>
      %18 = vector.multi_reduction <add>, %17, %cst [1, 2] : vector<1x8x256xf32> to vector<1xf32>
      %19 = vector.shape_cast %18 : vector<1xf32> to vector<1x1x1xf32>
      %20 = vector.extract %19[0, 0, 0] : f32 from vector<1x1x1xf32>
      %cst_14 = arith.constant 5.000000e-01 : f32
      %21 = arith.mulf %cst_14, %20 : f32
      %cst_15 = arith.constant 4.8828125E-4 : f32
      %22 = arith.mulf %21, %cst_15 : f32
      %c0_16 = arith.constant 0 : index
      %c0_17 = arith.constant 0 : index
      %23 = memref.load %arg4[%c0_16, %c0_17] : memref<1x1xf32, #tpu.memory_space<smem>>
      memref.store %22, %arg4[%c0_16, %c0_17] : memref<1x1xf32, #tpu.memory_space<smem>>
    } else {
    }
    return
  }
  func.func @transform_0(%arg0: i32) -> (i32, i32) {
    %c0_i32 = arith.constant 0 : i32
    %c0_i32_0 = arith.constant 0 : i32
    return %arg0, %c0_i32 : i32, i32
  }
  func.func @transform_1(%arg0: i32) -> (i32, i32) {
    %c0_i32 = arith.constant 0 : i32
    %c0_i32_0 = arith.constant 0 : i32
    return %arg0, %c0_i32 : i32, i32
  }
  func.func @transform_2(%arg0: i32) -> (i32, i32) {
    %c0_i32 = arith.constant 0 : i32
    %c0_i32_0 = arith.constant 0 : i32
    return %arg0, %c0_i32 : i32, i32
  }
  func.func @transform_3(%arg0: i32) -> (i32, i32) {
    %c0_i32 = arith.constant 0 : i32
    %c0_i32_0 = arith.constant 0 : i32
    %c0_i32_1 = arith.constant 0 : i32
    return %c0_i32, %c0_i32_0 : i32, i32
  }
}

</mosaic_0001>

<bundles_post_ra>
// kernel: tpu_custom_call.1
= control target key start
LH: loop header
LB: loop body
LE: loop exit
PB: predicated region body
PF: predicated region fallthrough
CT: control target
= control target key end

     0   :  { %8 = vsyncpa [#allocation4], 0  ;;  %s198_s0 = inlined_call_operand.hbm [shape: f32[8,256], index: 0, kind: input, shape index: {}]   ;;  %s199_s1 = inlined_call_operand.hbm [shape: f32[8,256], index: 1, kind: input, shape index: {}]   ;;  %s200_s2 = inlined_call_operand.vmem [shape: f32[8,1], index: 2, kind: input, shape index: {}]   ;;  %s201_s3 = inlined_call_operand.hbm [shape: f32[1,1], index: 3, kind: output, shape index: {}]  }
   0x1   :  { %9 = vsyncpa [#allocation7], 0 }
   0x2   :  { %10 = vsyncpa [#allocation5], 0  ;;  %s162_s12 = smov [#allocation3]   ;;  %s163_s14 = smov [#allocation6]  }
   0x3   :  { %s17_s13 = sshll.u32 %s162_s12, 4  ;;  %s27_s15 = sshll.u32 %s163_s14, 4  ;;  %s18_s13 = int_to_ptr.vmem [resolvable:$true] %s17_s13  ;;  %s28_s15 = int_to_ptr.vmem [resolvable:$true] %s27_s15 }
   0x4   :  { %s116_s16 = scalar_lea.vmem %s18_s13, 256  ;;  %p121_p1 = scmp.lt.s32.totalorder %s18_s13, %s18_s13 }
   0x5   :  { %p117_p0 = scmp.ne.s32.totalorder %s18_s13, %s116_s16  ;;  %p122_p2 = scmp.lt.s32.totalorder %s116_s16, %s116_s16 }
   0x7   :  { %p123_p3 = por %p122_p2, %p121_p1 }
   0x9   :  { %p124_p4 = pnand %p123_p3, %p117_p0 }
   0xb   :  { %127 = shalt.err (!%p124_p4)
}
   0xc   :  { %20 = dma.hbm_to_vmem [thread:$0]  %s198_s0, 256, %s18_s13, [#allocation4]  }
   0xd   :  { %s136_s19 = scalar_lea.vmem %s28_s15, 256  ;;  %p141_p6 = scmp.lt.s32.totalorder %s28_s15, %s28_s15 }
   0xe   :  { %p137_p5 = scmp.ne.s32.totalorder %s28_s15, %s136_s19  ;;  %p142_p7 = scmp.lt.s32.totalorder %s136_s19, %s136_s19 }
  0x10   :  { %p143_p8 = por %p142_p7, %p141_p6 }
  0x12   :  { %p144_p9 = pnand %p143_p8, %p137_p5 }
  0x14   :  { %147 = shalt.err (!%p144_p9)
}
  0x15   :  { %30 = dma.hbm_to_vmem [thread:$0]  %s199_s1, 256, %s28_s15, [#allocation7]  }
  0x16   :  { %156 = dma.done.wait [#allocation4], 256  }
  0x17   :  { %157 = vsyncadd [#allocation4], 4294967040 }
  0x18   :  { %158 = dma.done.wait [#allocation7], 256  }
  0x19   :  { %159 = vsyncadd [#allocation7], 4294967040  ;;  %v164_v0 = vmov 0   ;;  %v43_v1 = vld [vmem:[%s200_s2] sm:$0xff]  ;;  %v40_v3 = vld [vmem:[#allocation3 + $0x8] sm:$0xff]  ;;  %s165_s24 = smov [#allocation8]  }
  0x1a   :  { %107 = vset.pattern.permute.xlu0 %v164_v0  ;;  %v39_v2 = vld [vmem:[#allocation3] sm:$0xff]  ;;  %v41_v4 = vld [vmem:[#allocation6] sm:$0xff]  ;;  %v42_v5 = vld [vmem:[#allocation6 + $0x8] sm:$0xff] }
  0x1b   :  { %54 = vperm.xlu0 %107, %v43_v1   ;;  %v50_v6 = vsub.f32 %v39_v2, %v41_v4  ;;  %v51_v7 = vsub.f32 %v40_v3, %v42_v5 }
  0x96   :  { %v55_v8 = vpop.permute.xlu0 %54 }
  0x97   :  { %v57_v9 = vmul.f32 %v55_v8, %v50_v6  ;;  %v58_v10 = vmul.f32 %v55_v8, %v51_v7 }
  0x99   :  { %v59_v11 = vmul.f32 %v57_v9, %v57_v9  ;;  %v60_v12 = vmul.f32 %v58_v10, %v58_v10 }
  0x9b   :  { %v72_v13 = vadd.f32 %v60_v12, %v59_v11 }
  0x9d   :  { %73 = vadd.xlane.f32.xlu0 %v72_v13 }
 0x126   :  { %v74_v14 = vpop.xlane.xlu0 %73 }
 0x127   :  { %v75_v15 = vrot.slane %v74_v14, 4 }
 0x129   :  { %v76_v16 = vadd.f32 %v75_v15, %v74_v14 }
 0x12b   :  { %v77_v17 = vrot.slane %v76_v16, 2 }
 0x12d   :  { %v78_v18 = vadd.f32 %v77_v17, %v76_v16 }
 0x12f   :  { %v79_v19 = vrot.slane %v78_v18, 1 }
 0x131   :  { %v80_v20 = vadd.f32 %v79_v19, %v78_v18 }
 0x133   :  { %101 = vpush %v80_v20 }
 0x164   :  { %s102_s0 = spop %101 }
 0x165   :  { %s82_s1 = smul.f32 0.5, %s102_s0 }
 0x167   :  { %s83_s2 = smul.f32 0.00048828125, %s82_s1 }
 0x169   :  { %85 = sst [smem:[#allocation8]] %s83_s2 }
 0x16a   :  { %93 = dma.smem_to_hbm %s165_s24, 16, %s201_s3, [#allocation5]  }
 0x16b   :  { %160 = dma.done.wait [#allocation5], 16  }
 0x16c   :  { %161 = vsyncadd [#allocation5], 4294967280 }
 0x16d   :  { %97 = sfence }
 0x16e   :  { %98 = vsyncpa [#allocation4], 1 }
 0x16f   :  { %99 = vsyncpa [#allocation7], 1 }
 0x170   :  { %100 = vsyncpa [#allocation5], 1 }

</bundles_post_ra>
